<compile_context>
chip_gen: v5e
topology: v5e:2x2
jax: 0.10.0
libtpu: 0.0.40
codegen_flags: <defaults>
</compile_context>

<pallas_src>
import functools
from typing import NamedTuple

import jax
import jax.numpy as jnp
from jax.experimental import pallas as pl
from jax.experimental.pallas import tpu as pltpu

LANE = 128      # lane width of a vreg (last dim)
SUBLANE = 8     # f32 sublane count (second-to-last dim)


def _cdiv(a, b):
    return -(-a // b)


def _round_up(x, m):
    return ((x + m - 1) // m) * m


def _pad2d(a, rows, cols, dtype):
    a = jnp.asarray(a, dtype)
    r, c = a.shape
    if (r, c) == (rows, cols):
        return a
    return jnp.pad(a, ((0, rows - r), (0, cols - c)))


class PreparedParams(NamedTuple):
    """Lane-padded (multiples of 128) and dtype-cast parameters.

    Weights are bf16 (MXU operand dtype); biases stay f32 (bias-add / ReLU is
    done in f32 on the f32-accumulated matmul result).  Built ONCE by
    prepare_params() and reused across calls.
    """
    w1: jax.Array
    b1: jax.Array
    w2: jax.Array
    b2: jax.Array
    w3: jax.Array
    b3: jax.Array
    w4: jax.Array
    b4: jax.Array


def prepare_params(params, *, operand_dtype=jnp.bfloat16):
    """Pad feature dims to multiples of 128 and cast weights once; cache the result."""
    d_in, d1 = params["w1"].shape
    d2 = params["w2"].shape[1]
    d3 = params["w3"].shape[1]
    d_out = params["w4"].shape[1]
    p_in, p1, p2, p3, p_out = (
        _round_up(d, LANE) for d in (d_in, d1, d2, d3, d_out))
    prep = PreparedParams(
        w1=_pad2d(params["w1"], p_in, p1, operand_dtype),
        b1=_pad2d(params["b1"], 1, p1, jnp.float32),
        w2=_pad2d(params["w2"], p1, p2, operand_dtype),
        b2=_pad2d(params["b2"], 1, p2, jnp.float32),
        w3=_pad2d(params["w3"], p2, p3, operand_dtype),
        b3=_pad2d(params["b3"], 1, p3, jnp.float32),
        w4=_pad2d(params["w4"], p3, p_out, operand_dtype),
        b4=_pad2d(params["b4"], 1, p_out, jnp.float32),
    )
    return prep, d_out


def mlp_kernel(x_ref, w1_ref, b1_ref, w2_ref, b2_ref,
               w3_ref, b3_ref, w4_ref, b4_ref, o_ref):
    op_dt = w1_ref.dtype  # bf16 MXU operands; accumulate + bias/ReLU in f32.
    # fc1 + ReLU
    h = jnp.dot(x_ref[...], w1_ref[...], preferred_element_type=jnp.float32)
    h = jnp.maximum(h + b1_ref[...], 0.0).astype(op_dt)
    # fc2 + ReLU (+ dropout = identity in eval mode)
    h = jnp.dot(h, w2_ref[...], preferred_element_type=jnp.float32)
    h = jnp.maximum(h + b2_ref[...], 0.0).astype(op_dt)
    # fc3 + ReLU (+ dropout = identity in eval mode)
    h = jnp.dot(h, w3_ref[...], preferred_element_type=jnp.float32)
    h = jnp.maximum(h + b3_ref[...], 0.0).astype(op_dt)
    # fc4 (no activation)
    y = jnp.dot(h, w4_ref[...], preferred_element_type=jnp.float32)
    o_ref[...] = (y + b4_ref[...]).astype(o_ref.dtype)


def _pick_row_tile(batch, block_rows, min_grid_steps):
    """Row tile with bounded batch-pad overshoot (< 8 rows per tile)."""
    n_tiles = max(_cdiv(batch, block_rows), min_grid_steps)
    n_tiles = max(1, min(n_tiles, _cdiv(batch, SUBLANE)))  # >= 8 rows per tile
    bm = _round_up(_cdiv(batch, n_tiles), SUBLANE)
    b_pad = n_tiles * bm
    return bm, b_pad, n_tiles


@functools.partial(
    jax.jit,
    static_argnames=("d_out", "block_rows", "min_grid_steps", "single_buffer_weights"),
)
def _forward_pallas(x, prep, *, d_out, block_rows, min_grid_steps,
                    single_buffer_weights):
    batch, d_in = x.shape
    p_in, p1 = prep.w1.shape
    p2 = prep.w2.shape[1]
    p3 = prep.w3.shape[1]
    p_out = prep.w4.shape[1]
    op_dtype = prep.w1.dtype

    bm, b_pad, n_tiles = _pick_row_tile(batch, block_rows, min_grid_steps)

    # Pad/cast x only when needed (no-op for aligned batch & 128-multiple d_in,
    # other than the bf16 cast).
    x_p = _pad2d(x, b_pad, p_in, op_dtype)

    if single_buffer_weights:
        def resident(shape):
            # Constant index_map -> stays VMEM-resident across grid steps;
            # Buffered(1) -> no pointless second buffer (halves weight VMEM,
            # matters on v7x's 64 MiB VMEM).
            return pl.BlockSpec(shape, lambda i: (0, 0),
                                pipeline_mode=pl.Buffered(1))
    else:
        def resident(shape):
            return pl.BlockSpec(shape, lambda i: (0, 0))

    # VMEM budget: weights+biases (single-buffered), double-buffered x / out
    # row tiles, f32 intermediates; 2x headroom, clamped to [32 MiB, 64 MiB].
    wb_bytes = sum(int(a.size) * a.dtype.itemsize
                   for a in (prep.w1, prep.w2, prep.w3, prep.w4,
                             prep.b1, prep.b2, prep.b3, prep.b4))
    op_isz = jnp.dtype(op_dtype).itemsize
    tile_bytes = 2 * bm * p_in * op_isz + 2 * bm * p_out * 4
    act_bytes = 2 * bm * max(p1, p2, p3) * 4
    needed = wb_bytes + tile_bytes + act_bytes
    vmem_limit = int(min(max(2 * needed, 32 * 1024 * 1024), 64 * 1024 * 1024))

    out_padded = pl.pallas_call(
        mlp_kernel,
        out_shape=jax.ShapeDtypeStruct((b_pad, p_out), jnp.float32),
        grid=(n_tiles,),
        in_specs=[
            pl.BlockSpec((bm, p_in), lambda i: (i, 0)),   # x: tiled over batch
            resident((p_in, p1)), resident((1, p1)),
            resident((p1, p2)), resident((1, p2)),
            resident((p2, p3)), resident((1, p3)),
            resident((p3, p_out)), resident((1, p_out)),
        ],
        out_specs=pl.BlockSpec((bm, p_out), lambda i: (i, 0)),
        compiler_params=pltpu.CompilerParams(
            dimension_semantics=("parallel",),
            vmem_limit_bytes=vmem_limit),
    )(x_p, prep.w1, prep.b1, prep.w2, prep.b2, prep.w3, prep.b3,
      prep.w4, prep.b4)

    return out_padded[:batch, :d_out]


@functools.partial(jax.jit, static_argnames=("d_out",))
def _forward_xla(x, prep, d_out):
    """Plain-XLA path for toy shapes (pallas_call overhead dominated)."""
    f32 = jnp.float32
    h = x.astype(f32)
    h = jnp.maximum(h @ prep.w1[:h.shape[1]].astype(f32) + prep.b1, 0.0)
    h = jnp.maximum(h @ prep.w2.astype(f32) + prep.b2, 0.0)
    h = jnp.maximum(h @ prep.w3.astype(f32) + prep.b3, 0.0)
    y = h @ prep.w4.astype(f32) + prep.b4
    return y[:, :d_out]


def _device_kind():
    try:
        return jax.devices()[0].device_kind.lower()
    except Exception:
        return ""


def _default_block_rows():
    kind = _device_kind()
    if "v7" in kind or "7x" in kind:
        return 256        # v7x: 64 MiB VMEM -> smaller row tiles
    if "v6" in kind:
        return 1024       # v6e: 128 MiB VMEM -> bigger tiles reach HBM roofline
    return 512


def _default_min_grid_steps():
    kind = _device_kind()
    return 2 if ("v7" in kind or "7x" in kind) else 1   # 2 TCs per v7x chip


def complex_sentiment_classifier(x, prep, d_out, *, block_rows=None,
                                 min_grid_steps=None, min_pallas_rows=0):
    """Forward pass.  Use `prep, d_out = prepare_params(params)` once and cache it."""
    if block_rows is None:
        block_rows = _default_block_rows()
    if min_grid_steps is None:
        min_grid_steps = _default_min_grid_steps()

    # Optional tiny-batch bypass (overhead/padding dominated); default-off so
    # the Pallas kernel is always exercised in this script.
    if x.shape[0] < min_pallas_rows:
        return _forward_xla(x, prep, d_out)

    kwargs = dict(d_out=d_out, block_rows=block_rows,
                  min_grid_steps=min_grid_steps)
    try:
        return _forward_pallas(x, prep, single_buffer_weights=True, **kwargs)
    except Exception:
        # Fallback for jax builds where pipeline_mode=pl.Buffered(1) on a
        # resident BlockSpec is not supported: default double-buffered specs.
        return _forward_pallas(x, prep, single_buffer_weights=False, **kwargs)


def init_params(key, input_dim, hidden_dim, output_dim):
    """Deterministic init mimicking nn.Linear's U(-1/sqrt(fan_in), 1/sqrt(fan_in))."""
    dims = [(input_dim, hidden_dim),
            (hidden_dim, hidden_dim // 2),
            (hidden_dim // 2, hidden_dim // 4),
            (hidden_dim // 4, output_dim)]
    params = {}
    for i, (fan_in, fan_out) in enumerate(dims, start=1):
        key, kw, kb = jax.random.split(key, 3)
        bound = 1.0 / jnp.sqrt(float(fan_in))
        params[f"w{i}"] = jax.random.uniform(
            kw, (fan_in, fan_out), jnp.float32, -bound, bound)
        params[f"b{i}"] = jax.random.uniform(
            kb, (1, fan_out), jnp.float32, -bound, bound)
    return params


def reference_forward(x, params):
    """Pure-JAX f32 reference of the PyTorch forward (eval mode)."""
    h = jnp.maximum(x @ params["w1"] + params["b1"], 0.0)
    h = jnp.maximum(h @ params["w2"] + params["b2"], 0.0)
    h = jnp.maximum(h @ params["w3"] + params["b3"], 0.0)
    return h @ params["w4"] + params["b4"]


if __name__ == "__main__":
    key = jax.random.PRNGKey(0)
    key, kx, kp, kx2 = jax.random.split(key, 4)

    batch = 8
    input_dim = 32
    hidden_dim = 32      # -> hidden/2 = 16, hidden/4 = 8
    output_dim = 4

    params = init_params(kp, input_dim, hidden_dim, output_dim)
    prep, d_out = prepare_params(params)   # pad + cast ONCE, reused below

    # Small-batch check (bf16 operands -> loosened tolerance vs f32 reference).
    x = jax.random.normal(kx, (batch, input_dim), dtype=jnp.float32)
    out = jax.block_until_ready(complex_sentiment_classifier(x, prep, d_out))
    ref = reference_forward(x, params)
    assert out.shape == (batch, output_dim)
    assert jnp.allclose(out, ref, atol=5e-2, rtol=5e-2), "mismatch vs reference"

    # Ragged batch + multi-step grid check (exercises bounded tail padding,
    # pipelining, and VMEM-resident weights across grid steps).
    x2 = jax.random.normal(kx2, (37, input_dim), dtype=jnp.float32)
    out2 = jax.block_until_ready(
        complex_sentiment_classifier(x2, prep, d_out, block_rows=16))
    ref2 = reference_forward(x2, params)
    assert out2.shape == (37, output_dim)
    assert jnp.allclose(out2, ref2, atol=5e-2, rtol=5e-2), "mismatch vs reference (grid)"

    print("KERNEL_OK")
</pallas_src>

<mosaic_0001>
module attributes {stable_mosaic.version = 11 : i64} {
  func.func @mlp_kernel(%arg0: i32, %arg1: memref<8x128xbf16, #tpu.memory_space<vmem>>, %arg2: memref<128x128xbf16, #tpu.memory_space<vmem>>, %arg3: memref<1x128xf32, #tpu.memory_space<vmem>>, %arg4: memref<128x128xbf16, #tpu.memory_space<vmem>>, %arg5: memref<1x128xf32, #tpu.memory_space<vmem>>, %arg6: memref<128x128xbf16, #tpu.memory_space<vmem>>, %arg7: memref<1x128xf32, #tpu.memory_space<vmem>>, %arg8: memref<128x128xbf16, #tpu.memory_space<vmem>>, %arg9: memref<1x128xf32, #tpu.memory_space<vmem>>, %arg10: memref<8x128xf32, #tpu.memory_space<vmem>>) attributes {dimension_semantics = [#tpu.dimension_semantics<parallel>], iteration_bounds = array<i64: 1>, scalar_prefetch = 0 : i64, scratch_operands = 0 : i64, tpu.core_type = #tpu.core_type<tc>, window_params = [{transform_indices = @transform_0, window_bounds = array<i64: 8, 128>}, {pipeline_mode = #tpu.pipeline_mode<synchronous>, transform_indices = @transform_1, window_bounds = array<i64: 128, 128>}, {pipeline_mode = #tpu.pipeline_mode<synchronous>, transform_indices = @transform_2, window_bounds = array<i64: 1, 128>}, {pipeline_mode = #tpu.pipeline_mode<synchronous>, transform_indices = @transform_3, window_bounds = array<i64: 128, 128>}, {pipeline_mode = #tpu.pipeline_mode<synchronous>, transform_indices = @transform_4, window_bounds = array<i64: 1, 128>}, {pipeline_mode = #tpu.pipeline_mode<synchronous>, transform_indices = @transform_5, window_bounds = array<i64: 128, 128>}, {pipeline_mode = #tpu.pipeline_mode<synchronous>, transform_indices = @transform_6, window_bounds = array<i64: 1, 128>}, {pipeline_mode = #tpu.pipeline_mode<synchronous>, transform_indices = @transform_7, window_bounds = array<i64: 128, 128>}, {pipeline_mode = #tpu.pipeline_mode<synchronous>, transform_indices = @transform_8, window_bounds = array<i64: 1, 128>}, {transform_indices = @transform_9, window_bounds = array<i64: 8, 128>}]} {
    %c0 = arith.constant 0 : index
    %c0_0 = arith.constant 0 : index
    %0 = vector.load %arg1[%c0, %c0_0] : memref<8x128xbf16, #tpu.memory_space<vmem>>, vector<8x128xbf16>
    %c0_1 = arith.constant 0 : index
    %c0_2 = arith.constant 0 : index
    %1 = vector.load %arg2[%c0_1, %c0_2] : memref<128x128xbf16, #tpu.memory_space<vmem>>, vector<128x128xbf16>
    %cst = arith.constant dense<0.000000e+00> : vector<8x128xf32>
    %2 = tpu.matmul %0, %1, %cst {dimension_numbers = #tpu.dot_dimension_numbers<[1], [0], [0], [1], [0, 0, 1, 1], [], []>} : vector<8x128xbf16>, vector<128x128xbf16>, vector<8x128xf32> -> vector<8x128xf32>
    %c0_3 = arith.constant 0 : index
    %c0_4 = arith.constant 0 : index
    %3 = vector.load %arg3[%c0_3, %c0_4] : memref<1x128xf32, #tpu.memory_space<vmem>>, vector<1x128xf32>
    %4 = vector.broadcast %3 : vector<1x128xf32> to vector<8x128xf32>
    %5 = arith.addf %2, %4 : vector<8x128xf32>
    %cst_5 = arith.constant 0.000000e+00 : f32
    %6 = vector.broadcast %cst_5 : f32 to vector<8x128xf32>
    %7 = arith.maximumf %5, %6 : vector<8x128xf32>
    %8 = arith.truncf %7 : vector<8x128xf32> to vector<8x128xbf16>
    %c0_6 = arith.constant 0 : index
    %c0_7 = arith.constant 0 : index
    %9 = vector.load %arg4[%c0_6, %c0_7] : memref<128x128xbf16, #tpu.memory_space<vmem>>, vector<128x128xbf16>
    %cst_8 = arith.constant dense<0.000000e+00> : vector<8x128xf32>
    %10 = tpu.matmul %8, %9, %cst_8 {dimension_numbers = #tpu.dot_dimension_numbers<[1], [0], [0], [1], [0, 0, 1, 1], [], []>} : vector<8x128xbf16>, vector<128x128xbf16>, vector<8x128xf32> -> vector<8x128xf32>
    %c0_9 = arith.constant 0 : index
    %c0_10 = arith.constant 0 : index
    %11 = vector.load %arg5[%c0_9, %c0_10] : memref<1x128xf32, #tpu.memory_space<vmem>>, vector<1x128xf32>
    %12 = vector.broadcast %11 : vector<1x128xf32> to vector<8x128xf32>
    %13 = arith.addf %10, %12 : vector<8x128xf32>
    %cst_11 = arith.constant 0.000000e+00 : f32
    %14 = vector.broadcast %cst_11 : f32 to vector<8x128xf32>
    %15 = arith.maximumf %13, %14 : vector<8x128xf32>
    %16 = arith.truncf %15 : vector<8x128xf32> to vector<8x128xbf16>
    %c0_12 = arith.constant 0 : index
    %c0_13 = arith.constant 0 : index
    %17 = vector.load %arg6[%c0_12, %c0_13] : memref<128x128xbf16, #tpu.memory_space<vmem>>, vector<128x128xbf16>
    %cst_14 = arith.constant dense<0.000000e+00> : vector<8x128xf32>
    %18 = tpu.matmul %16, %17, %cst_14 {dimension_numbers = #tpu.dot_dimension_numbers<[1], [0], [0], [1], [0, 0, 1, 1], [], []>} : vector<8x128xbf16>, vector<128x128xbf16>, vector<8x128xf32> -> vector<8x128xf32>
    %c0_15 = arith.constant 0 : index
    %c0_16 = arith.constant 0 : index
    %19 = vector.load %arg7[%c0_15, %c0_16] : memref<1x128xf32, #tpu.memory_space<vmem>>, vector<1x128xf32>
    %20 = vector.broadcast %19 : vector<1x128xf32> to vector<8x128xf32>
    %21 = arith.addf %18, %20 : vector<8x128xf32>
    %cst_17 = arith.constant 0.000000e+00 : f32
    %22 = vector.broadcast %cst_17 : f32 to vector<8x128xf32>
    %23 = arith.maximumf %21, %22 : vector<8x128xf32>
    %24 = arith.truncf %23 : vector<8x128xf32> to vector<8x128xbf16>
    %c0_18 = arith.constant 0 : index
    %c0_19 = arith.constant 0 : index
    %25 = vector.load %arg8[%c0_18, %c0_19] : memref<128x128xbf16, #tpu.memory_space<vmem>>, vector<128x128xbf16>
    %cst_20 = arith.constant dense<0.000000e+00> : vector<8x128xf32>
    %26 = tpu.matmul %24, %25, %cst_20 {dimension_numbers = #tpu.dot_dimension_numbers<[1], [0], [0], [1], [0, 0, 1, 1], [], []>} : vector<8x128xbf16>, vector<128x128xbf16>, vector<8x128xf32> -> vector<8x128xf32>
    %c0_21 = arith.constant 0 : index
    %c0_22 = arith.constant 0 : index
    %27 = vector.load %arg9[%c0_21, %c0_22] : memref<1x128xf32, #tpu.memory_space<vmem>>, vector<1x128xf32>
    %28 = vector.broadcast %27 : vector<1x128xf32> to vector<8x128xf32>
    %29 = arith.addf %26, %28 : vector<8x128xf32>
    %c0_23 = arith.constant 0 : index
    %c0_24 = arith.constant 0 : index
    %30 = vector.load %arg10[%c0_23, %c0_24] : memref<8x128xf32, #tpu.memory_space<vmem>>, vector<8x128xf32>
    tpu.vector_store %arg10[%c0_23, %c0_24], %29 {strides = array<i32>} : memref<8x128xf32, #tpu.memory_space<vmem>>, vector<8x128xf32>,
    return
  }
  func.func @transform_0(%arg0: i32) -> (i32, i32) {
    %c0_i32 = arith.constant 0 : i32
    %c0_i32_0 = arith.constant 0 : i32
    return %arg0, %c0_i32 : i32, i32
  }
  func.func @transform_1(%arg0: i32) -> (i32, i32) {
    %c0_i32 = arith.constant 0 : i32
    %c0_i32_0 = arith.constant 0 : i32
    %c0_i32_1 = arith.constant 0 : i32
    return %c0_i32, %c0_i32_0 : i32, i32
  }
  func.func @transform_2(%arg0: i32) -> (i32, i32) {
    %c0_i32 = arith.constant 0 : i32
    %c0_i32_0 = arith.constant 0 : i32
    %c0_i32_1 = arith.constant 0 : i32
    return %c0_i32, %c0_i32_0 : i32, i32
  }
  func.func @transform_3(%arg0: i32) -> (i32, i32) {
    %c0_i32 = arith.constant 0 : i32
    %c0_i32_0 = arith.constant 0 : i32
    %c0_i32_1 = arith.constant 0 : i32
    return %c0_i32, %c0_i32_0 : i32, i32
  }
  func.func @transform_4(%arg0: i32) -> (i32, i32) {
    %c0_i32 = arith.constant 0 : i32
    %c0_i32_0 = arith.constant 0 : i32
    %c0_i32_1 = arith.constant 0 : i32
    return %c0_i32, %c0_i32_0 : i32, i32
  }
  func.func @transform_5(%arg0: i32) -> (i32, i32) {
    %c0_i32 = arith.constant 0 : i32
    %c0_i32_0 = arith.constant 0 : i32
    %c0_i32_1 = arith.constant 0 : i32
    return %c0_i32, %c0_i32_0 : i32, i32
  }
  func.func @transform_6(%arg0: i32) -> (i32, i32) {
    %c0_i32 = arith.constant 0 : i32
    %c0_i32_0 = arith.constant 0 : i32
    %c0_i32_1 = arith.constant 0 : i32
    return %c0_i32, %c0_i32_0 : i32, i32
  }
  func.func @transform_7(%arg0: i32) -> (i32, i32) {
    %c0_i32 = arith.constant 0 : i32
    %c0_i32_0 = arith.constant 0 : i32
    %c0_i32_1 = arith.constant 0 : i32
    return %c0_i32, %c0_i32_0 : i32, i32
  }
  func.func @transform_8(%arg0: i32) -> (i32, i32) {
    %c0_i32 = arith.constant 0 : i32
    %c0_i32_0 = arith.constant 0 : i32
    %c0_i32_1 = arith.constant 0 : i32
    return %c0_i32, %c0_i32_0 : i32, i32
  }
  func.func @transform_9(%arg0: i32) -> (i32, i32) {
    %c0_i32 = arith.constant 0 : i32
    %c0_i32_0 = arith.constant 0 : i32
    return %arg0, %c0_i32 : i32, i32
  }
}

module attributes {stable_mosaic.version = 11 : i64} {
  func.func @mlp_kernel(%arg0: i32, %arg1: memref<8x128xbf16, #tpu.memory_space<vmem>>, %arg2: memref<128x128xbf16, #tpu.memory_space<vmem>>, %arg3: memref<1x128xf32, #tpu.memory_space<vmem>>, %arg4: memref<128x128xbf16, #tpu.memory_space<vmem>>, %arg5: memref<1x128xf32, #tpu.memory_space<vmem>>, %arg6: memref<128x128xbf16, #tpu.memory_space<vmem>>, %arg7: memref<1x128xf32, #tpu.memory_space<vmem>>, %arg8: memref<128x128xbf16, #tpu.memory_space<vmem>>, %arg9: memref<1x128xf32, #tpu.memory_space<vmem>>, %arg10: memref<8x128xf32, #tpu.memory_space<vmem>>) attributes {dimension_semantics = [#tpu.dimension_semantics<parallel>], iteration_bounds = array<i64: 1>, scalar_prefetch = 0 : i64, scratch_operands = 0 : i64, tpu.core_type = #tpu.core_type<tc>, window_params = [{transform_indices = @transform_0, window_bounds = array<i64: 8, 128>}, {pipeline_mode = #tpu.pipeline_mode<synchronous>, transform_indices = @transform_1, window_bounds = array<i64: 128, 128>}, {pipeline_mode = #tpu.pipeline_mode<synchronous>, transform_indices = @transform_2, window_bounds = array<i64: 1, 128>}, {pipeline_mode = #tpu.pipeline_mode<synchronous>, transform_indices = @transform_3, window_bounds = array<i64: 128, 128>}, {pipeline_mode = #tpu.pipeline_mode<synchronous>, transform_indices = @transform_4, window_bounds = array<i64: 1, 128>}, {pipeline_mode = #tpu.pipeline_mode<synchronous>, transform_indices = @transform_5, window_bounds = array<i64: 128, 128>}, {pipeline_mode = #tpu.pipeline_mode<synchronous>, transform_indices = @transform_6, window_bounds = array<i64: 1, 128>}, {pipeline_mode = #tpu.pipeline_mode<synchronous>, transform_indices = @transform_7, window_bounds = array<i64: 128, 128>}, {pipeline_mode = #tpu.pipeline_mode<synchronous>, transform_indices = @transform_8, window_bounds = array<i64: 1, 128>}, {transform_indices = @transform_9, window_bounds = array<i64: 8, 128>}]} {
    %c0 = arith.constant 0 : index
    %c0_0 = arith.constant 0 : index
    %0 = vector.load %arg1[%c0, %c0_0] : memref<8x128xbf16, #tpu.memory_space<vmem>>, vector<8x128xbf16>
    %c0_1 = arith.constant 0 : index
    %c0_2 = arith.constant 0 : index
    %1 = vector.load %arg2[%c0_1, %c0_2] : memref<128x128xbf16, #tpu.memory_space<vmem>>, vector<128x128xbf16>
    %cst = arith.constant dense<0.000000e+00> : vector<8x128xf32>
    %2 = tpu.matmul %0, %1, %cst {dimension_numbers = #tpu.dot_dimension_numbers<[1], [0], [0], [1], [0, 0, 1, 1], [], []>} : vector<8x128xbf16>, vector<128x128xbf16>, vector<8x128xf32> -> vector<8x128xf32>
    %c0_3 = arith.constant 0 : index
    %c0_4 = arith.constant 0 : index
    %3 = vector.load %arg3[%c0_3, %c0_4] : memref<1x128xf32, #tpu.memory_space<vmem>>, vector<1x128xf32>
    %4 = vector.broadcast %3 : vector<1x128xf32> to vector<8x128xf32>
    %5 = arith.addf %2, %4 : vector<8x128xf32>
    %cst_5 = arith.constant 0.000000e+00 : f32
    %6 = vector.broadcast %cst_5 : f32 to vector<8x128xf32>
    %7 = arith.maximumf %5, %6 : vector<8x128xf32>
    %8 = arith.truncf %7 : vector<8x128xf32> to vector<8x128xbf16>
    %c0_6 = arith.constant 0 : index
    %c0_7 = arith.constant 0 : index
    %9 = vector.load %arg4[%c0_6, %c0_7] : memref<128x128xbf16, #tpu.memory_space<vmem>>, vector<128x128xbf16>
    %cst_8 = arith.constant dense<0.000000e+00> : vector<8x128xf32>
    %10 = tpu.matmul %8, %9, %cst_8 {dimension_numbers = #tpu.dot_dimension_numbers<[1], [0], [0], [1], [0, 0, 1, 1], [], []>} : vector<8x128xbf16>, vector<128x128xbf16>, vector<8x128xf32> -> vector<8x128xf32>
    %c0_9 = arith.constant 0 : index
    %c0_10 = arith.constant 0 : index
    %11 = vector.load %arg5[%c0_9, %c0_10] : memref<1x128xf32, #tpu.memory_space<vmem>>, vector<1x128xf32>
    %12 = vector.broadcast %11 : vector<1x128xf32> to vector<8x128xf32>
    %13 = arith.addf %10, %12 : vector<8x128xf32>
    %cst_11 = arith.constant 0.000000e+00 : f32
    %14 = vector.broadcast %cst_11 : f32 to vector<8x128xf32>
    %15 = arith.maximumf %13, %14 : vector<8x128xf32>
    %16 = arith.truncf %15 : vector<8x128xf32> to vector<8x128xbf16>
    %c0_12 = arith.constant 0 : index
    %c0_13 = arith.constant 0 : index
    %17 = vector.load %arg6[%c0_12, %c0_13] : memref<128x128xbf16, #tpu.memory_space<vmem>>, vector<128x128xbf16>
    %cst_14 = arith.constant dense<0.000000e+00> : vector<8x128xf32>
    %18 = tpu.matmul %16, %17, %cst_14 {dimension_numbers = #tpu.dot_dimension_numbers<[1], [0], [0], [1], [0, 0, 1, 1], [], []>} : vector<8x128xbf16>, vector<128x128xbf16>, vector<8x128xf32> -> vector<8x128xf32>
    %c0_15 = arith.constant 0 : index
    %c0_16 = arith.constant 0 : index
    %19 = vector.load %arg7[%c0_15, %c0_16] : memref<1x128xf32, #tpu.memory_space<vmem>>, vector<1x128xf32>
    %20 = vector.broadcast %19 : vector<1x128xf32> to vector<8x128xf32>
    %21 = arith.addf %18, %20 : vector<8x128xf32>
    %cst_17 = arith.constant 0.000000e+00 : f32
    %22 = vector.broadcast %cst_17 : f32 to vector<8x128xf32>
    %23 = arith.maximumf %21, %22 : vector<8x128xf32>
    %24 = arith.truncf %23 : vector<8x128xf32> to vector<8x128xbf16>
    %c0_18 = arith.constant 0 : index
    %c0_19 = arith.constant 0 : index
    %25 = vector.load %arg8[%c0_18, %c0_19] : memref<128x128xbf16, #tpu.memory_space<vmem>>, vector<128x128xbf16>
    %cst_20 = arith.constant dense<0.000000e+00> : vector<8x128xf32>
    %26 = tpu.matmul %24, %25, %cst_20 {dimension_numbers = #tpu.dot_dimension_numbers<[1], [0], [0], [1], [0, 0, 1, 1], [], []>} : vector<8x128xbf16>, vector<128x128xbf16>, vector<8x128xf32> -> vector<8x128xf32>
    %c0_21 = arith.constant 0 : index
    %c0_22 = arith.constant 0 : index
    %27 = vector.load %arg9[%c0_21, %c0_22] : memref<1x128xf32, #tpu.memory_space<vmem>>, vector<1x128xf32>
    %28 = vector.broadcast %27 : vector<1x128xf32> to vector<8x128xf32>
    %29 = arith.addf %26, %28 : vector<8x128xf32>
    %c0_23 = arith.constant 0 : index
    %c0_24 = arith.constant 0 : index
    %30 = vector.load %arg10[%c0_23, %c0_24] : memref<8x128xf32, #tpu.memory_space<vmem>>, vector<8x128xf32>
    tpu.vector_store %arg10[%c0_23, %c0_24], %29 {strides = array<i32>} : memref<8x128xf32, #tpu.memory_space<vmem>>, vector<8x128xf32>,
    return
  }
  func.func @transform_0(%arg0: i32) -> (i32, i32) {
    %c0_i32 = arith.constant 0 : i32
    %c0_i32_0 = arith.constant 0 : i32
    return %arg0, %c0_i32 : i32, i32
  }
  func.func @transform_1(%arg0: i32) -> (i32, i32) {
    %c0_i32 = arith.constant 0 : i32
    %c0_i32_0 = arith.constant 0 : i32
    %c0_i32_1 = arith.constant 0 : i32
    return %c0_i32, %c0_i32_0 : i32, i32
  }
  func.func @transform_2(%arg0: i32) -> (i32, i32) {
    %c0_i32 = arith.constant 0 : i32
    %c0_i32_0 = arith.constant 0 : i32
    %c0_i32_1 = arith.constant 0 : i32
    return %c0_i32, %c0_i32_0 : i32, i32
  }
  func.func @transform_3(%arg0: i32) -> (i32, i32) {
    %c0_i32 = arith.constant 0 : i32
    %c0_i32_0 = arith.constant 0 : i32
    %c0_i32_1 = arith.constant 0 : i32
    return %c0_i32, %c0_i32_0 : i32, i32
  }
  func.func @transform_4(%arg0: i32) -> (i32, i32) {
    %c0_i32 = arith.constant 0 : i32
    %c0_i32_0 = arith.constant 0 : i32
    %c0_i32_1 = arith.constant 0 : i32
    return %c0_i32, %c0_i32_0 : i32, i32
  }
  func.func @transform_5(%arg0: i32) -> (i32, i32) {
    %c0_i32 = arith.constant 0 : i32
    %c0_i32_0 = arith.constant 0 : i32
    %c0_i32_1 = arith.constant 0 : i32
    return %c0_i32, %c0_i32_0 : i32, i32
  }
  func.func @transform_6(%arg0: i32) -> (i32, i32) {
    %c0_i32 = arith.constant 0 : i32
    %c0_i32_0 = arith.constant 0 : i32
    %c0_i32_1 = arith.constant 0 : i32
    return %c0_i32, %c0_i32_0 : i32, i32
  }
  func.func @transform_7(%arg0: i32) -> (i32, i32) {
    %c0_i32 = arith.constant 0 : i32
    %c0_i32_0 = arith.constant 0 : i32
    %c0_i32_1 = arith.constant 0 : i32
    return %c0_i32, %c0_i32_0 : i32, i32
  }
  func.func @transform_8(%arg0: i32) -> (i32, i32) {
    %c0_i32 = arith.constant 0 : i32
    %c0_i32_0 = arith.constant 0 : i32
    %c0_i32_1 = arith.constant 0 : i32
    return %c0_i32, %c0_i32_0 : i32, i32
  }
  func.func @transform_9(%arg0: i32) -> (i32, i32) {
    %c0_i32 = arith.constant 0 : i32
    %c0_i32_0 = arith.constant 0 : i32
    return %arg0, %c0_i32 : i32, i32
  }
}

</mosaic_0001>

<bundles_post_ra>
// kernel: _forward_pallas.1
= control target key start
LH: loop header
LB: loop body
LE: loop exit
PB: predicated region body
PF: predicated region fallthrough
CT: control target
= control target key end

     0   :  { %14 = vsyncpa [#allocation3], 0  ;;  %s792_s0 = inlined_call_operand.vmem [shape: bf16[8,128], index: 0, kind: input, shape index: {}]   ;;  %s793_s1 = inlined_call_operand.hbm [shape: bf16[128,128], index: 1, kind: input, shape index: {}]   ;;  %s794_s2 = inlined_call_operand.vmem [shape: f32[1,128], index: 2, kind: input, shape index: {}]   ;;  %s795_s3 = inlined_call_operand.hbm [shape: bf16[128,128], index: 3, kind: input, shape index: {}]   ;;  %s796_s4 = inlined_call_operand.vmem [shape: f32[1,128], index: 4, kind: input, shape index: {}]   ;;  %s797_s5 = inlined_call_operand.hbm [shape: bf16[128,128], index: 5, kind: input, shape index: {}]   ;;  %s798_s6 = inlined_call_operand.vmem [shape: f32[1,128], index: 6, kind: input, shape index: {}]   ;;  %s799_s7 = inlined_call_operand.hbm [shape: bf16[128,128], index: 7, kind: input, shape index: {}]   ;;  %s800_s8 = inlined_call_operand.vmem [shape: f32[1,128], index: 8, kind: input, shape index: {}]   ;;  %s801_s9 = inlined_call_operand.vmem [shape: f32[8,128], index: 9, kind: output, shape index: {}]  }
   0x1   :  { %15 = vsyncpa [#allocation5], 0 }
   0x2   :  { %16 = vsyncpa [#allocation8], 0  ;;  %s38_s11 = sshll.u32 %s795_s3, 4  ;;  %s706_s12 = smov [#allocation4]   ;;  %s39_s11 = int_to_ptr.hbm [resolvable:$true] %s38_s11 }
   0x3   :  { %s40_s13 = sshll.u32 %s706_s12, 4  ;;  %s23_s16 = sshll.u32 %s793_s1, 4  ;;  %s41_s13 = int_to_ptr.vmem [resolvable:$true] %s40_s13  ;;  %s24_s16 = int_to_ptr.hbm [resolvable:$true] %s23_s16 }
   0x4   :  { %s707_s17 = smov 64   ;;  %s708_s18 = smov 4  }
   0x5   :  { %46 = dma.hbm_to_vmem [thread:$0]  %s39_s11, 1024, %s41_s13, [#allocation5], %s707_s17, %s707_s17, %s708_s18  }
   0x6   :  { %s709_s19 = smov [#allocation2]   ;;  %s53_s23 = sshll.u32 %s797_s5, 4  ;;  %s54_s23 = int_to_ptr.hbm [resolvable:$true] %s53_s23 }
   0x7   :  { %s25_s20 = sshll.u32 %s709_s19, 4  ;;  %s68_s25 = sshll.u32 %s799_s7, 4  ;;  %s26_s20 = int_to_ptr.vmem [resolvable:$true] %s25_s20  ;;  %s69_s25 = int_to_ptr.hbm [resolvable:$true] %s68_s25 }
   0x8   :  { %31 = dma.hbm_to_vmem [thread:$0]  %s24_s16, 1024, %s26_s20, [#allocation3], %s707_s17, %s707_s17, %s708_s18  }
   0x9   :  { %s710_s26 = smov [#allocation6]   ;;  %s711_s1 = smov [#allocation7]  }
   0xa   :  { %s55_s27 = sshll.u32 %s710_s26, 4  ;;  %s70_s28 = sshll.u32 %s711_s1, 4  ;;  %s56_s27 = int_to_ptr.vmem [resolvable:$true] %s55_s27  ;;  %s71_s28 = int_to_ptr.vmem [resolvable:$true] %s70_s28 }
   0xb   :  { %61 = dma.hbm_to_vmem [thread:$0]  %s54_s23, 1024, %s56_s27, [#allocation5], %s707_s17, %s707_s17, %s708_s18  }
   0xc   :  { %76 = dma.hbm_to_vmem [thread:$0]  %s69_s25, 1024, %s71_s28, [#allocation8], %s707_s17, %s707_s17, %s708_s18  }
   0xd   :  { %700 = dma.done.wait [#allocation3], 1024  }
   0xe   :  { %701 = vsyncadd [#allocation3], 4294966272 }
   0xf   :  { %702 = dma.done.wait [#allocation5], 2048  }
  0x10   :  { %703 = vsyncadd [#allocation5], 4294965248 }
  0x11   :  { %704 = dma.done.wait [#allocation8], 1024  }
  0x12   :  { %705 = vsyncadd [#allocation8], 4294966272  ;;  %v569_v0 = vld [vmem:[#allocation2 + $0x38] sm:$0xff]  ;;  %v568_v1 = vld [vmem:[#allocation2 + $0x30] sm:$0xff] }
  0x13   :  { %164 = vmatpush.bf16.msra.mxu0 %v569_v0  ;;  %v577_v2 = vld [vmem:[#allocation4 + $0x38] sm:$0xff]  ;;  %v576_v3 = vld [vmem:[#allocation4 + $0x30] sm:$0xff]  ;;  %v567_v4 = vld [vmem:[#allocation2 + $0x28] sm:$0xff] }
  0x14   :  { %247 = vmatpush.bf16.msra.mxu1 %v577_v2  ;;  %v575_v5 = vld [vmem:[#allocation4 + $0x28] sm:$0xff]  ;;  %v566_v6 = vld [vmem:[#allocation2 + $0x20] sm:$0xff]  ;;  %v565_v8 = vld [vmem:[#allocation2 + $0x18] sm:$0xff] }
  0x15   :  { %v574_v7 = vld [vmem:[#allocation4 + $0x20] sm:$0xff]  ;;  %v573_v9 = vld [vmem:[#allocation4 + $0x18] sm:$0xff]  ;;  %v564_v10 = vld [vmem:[#allocation2 + $0x10] sm:$0xff] }
  0x16   :  { %v572_v11 = vld [vmem:[#allocation4 + $0x10] sm:$0xff]  ;;  %v563_v12 = vld [vmem:[#allocation2 + $0x8] sm:$0xff]  ;;  %v562_v13 = vld [vmem:[#allocation2] sm:$0xff] }
  0x17   :  { %165 = vmatpush.bf16.msra.mxu0 %v568_v1  ;;  %v95_v14 = vld [vmem:[%s792_s0] sm:$0xf]  ;;  %v571_v15 = vld [vmem:[#allocation4 + $0x8] sm:$0xff]  ;;  %v585_v17 = vld [vmem:[#allocation6 + $0x38] sm:$0xff] }
  0x18   :  { %248 = vmatpush.bf16.msra.mxu1 %v576_v3  ;;  %v570_v16 = vld [vmem:[#allocation4] sm:$0xff]  ;;  %330 = vmatpush.bf16.msra.mxu2 %v585_v17  ;;  %v584_v18 = vld [vmem:[#allocation6 + $0x30] sm:$0xff]  ;;  %v583_v19 = vld [vmem:[#allocation6 + $0x28] sm:$0xff] }
  0x19   :  { %v582_v20 = vld [vmem:[#allocation6 + $0x20] sm:$0xff]  ;;  %v581_v21 = vld [vmem:[#allocation6 + $0x18] sm:$0xff]  ;;  %v580_v22 = vld [vmem:[#allocation6 + $0x10] sm:$0xff] }
  0x1a   :  { %v600_v23 = vld [vmem:[%s794_s2] ss:$0 sm:$0xff]  ;;  %v579_v29 = vld [vmem:[#allocation6 + $0x8] sm:$0xff]  ;;  %v593_v31 = vld [vmem:[#allocation7 + $0x38] sm:$0xff] }
  0x1b   :  { %166 = vmatpush.bf16.msra.mxu0 %v567_v4  ;;  %v578_v30 = vld [vmem:[#allocation6] sm:$0xff]  ;;  %413 = vmatpush.bf16.msra.mxu3 %v593_v31  ;;  %v592_v32 = vld [vmem:[#allocation7 + $0x30] sm:$0xff]  ;;  %v591_v33 = vld [vmem:[#allocation7 + $0x28] sm:$0xff] }
  0x1c   :  { %249 = vmatpush.bf16.msra.mxu1 %v575_v5  ;;  %331 = vmatpush.bf16.msra.mxu2 %v584_v18  ;;  %v590_v34 = vld [vmem:[#allocation7 + $0x20] sm:$0xff]  ;;  %v589_v35 = vld [vmem:[#allocation7 + $0x18] sm:$0xff]  ;;  %v588_v36 = vld [vmem:[#allocation7 + $0x10] sm:$0xff] }
  0x1d   :  { %v601_v37 = vld [vmem:[%s796_s4] ss:$0 sm:$0xff]  ;;  %v587_v43 = vld [vmem:[#allocation7 + $0x8] sm:$0xff] }
  0x1e   :  { %v586_v44 = vld [vmem:[#allocation7] sm:$0xff] }
  0x1f   :  { %167 = vmatpush.bf16.msra.mxu0 %v566_v6  ;;  %414 = vmatpush.bf16.msra.mxu3 %v592_v32  ;;  %v602_v45 = vld [vmem:[%s798_s6] ss:$0 sm:$0xff] }
  0x20   :  { %250 = vmatpush.bf16.msra.mxu1 %v574_v7  ;;  %332 = vmatpush.bf16.msra.mxu2 %v583_v19  ;;  %v603_v51 = vld [vmem:[%s800_s8] ss:$0 sm:$0xff] }
  0x23   :  { %168 = vmatpush.bf16.msra.mxu0 %v565_v8  ;;  %415 = vmatpush.bf16.msra.mxu3 %v591_v33 }
  0x24   :  { %251 = vmatpush.bf16.msra.mxu1 %v573_v9  ;;  %333 = vmatpush.bf16.msra.mxu2 %v582_v20 }
  0x27   :  { %169 = vmatpush.bf16.msra.mxu0 %v564_v10  ;;  %416 = vmatpush.bf16.msra.mxu3 %v590_v34 }
  0x28   :  { %252 = vmatpush.bf16.msra.mxu1 %v572_v11  ;;  %334 = vmatpush.bf16.msra.mxu2 %v581_v21 }
  0x2b   :  { %170 = vmatpush.bf16.msra.mxu0 %v563_v12  ;;  %417 = vmatpush.bf16.msra.mxu3 %v589_v35 }
  0x2c   :  { %253 = vmatpush.bf16.msra.mxu1 %v571_v15  ;;  %335 = vmatpush.bf16.msra.mxu2 %v580_v22 }
  0x2f   :  { %171 = vmatpush.bf16.msra.mxu0 %v562_v13  ;;  %418 = vmatpush.bf16.msra.mxu3 %v588_v36 }
  0x30   :  { %254 = vmatpush.bf16.msra.mxu1 %v570_v16  ;;  %336 = vmatpush.bf16.msra.mxu2 %v579_v29 }
  0x32   :  { %172 = vmatmul.bf16.vlgmr.msra.gmra.mxu0 %v95_v14 }
  0x33   :  { %419 = vmatpush.bf16.msra.mxu3 %v587_v43 }
  0x34   :  { %337 = vmatpush.bf16.msra.mxu2 %v578_v30 }
  0x37   :  { %420 = vmatpush.bf16.msra.mxu3 %v586_v44 }
  0xaf   :  { %v173_v24 = vpop.f32.mrf.mxu0 }
  0xb0   :  { %v174_v25 = vadd.f32 %v600_v23, %v173_v24 }
  0xb2   :  { %v177_v26 = vmax.f32 %v174_v25, 0.0 }
  0xb4   :  { %v178_v27 = vpack.c.bf16 %v177_v26, %v177_v26 }
  0xb6   :  { %255 = vmatmul.bf16.vlgmr.msra.gmra.mxu1 %v178_v27 }
  0xb7   :  { %v175_v28 = vpop.f32.mrf.mxu0 }
 0x133   :  { %v256_v38 = vpop.f32.mrf.mxu1 }
 0x134   :  { %v257_v39 = vadd.f32 %v601_v37, %v256_v38 }
 0x136   :  { %v260_v40 = vmax.f32 %v257_v39, 0.0 }
 0x138   :  { %v261_v41 = vpack.c.bf16 %v260_v40, %v260_v40 }
 0x13a   :  { %338 = vmatmul.bf16.vlgmr.msra.gmra.mxu2 %v261_v41 }
 0x13b   :  { %v258_v42 = vpop.f32.mrf.mxu1 }
 0x1bd   :  { %v339_v46 = vpop.f32.mrf.mxu2 }
 0x1be   :  { %v340_v47 = vadd.f32 %v602_v45, %v339_v46 }
 0x1c0   :  { %v343_v48 = vmax.f32 %v340_v47, 0.0 }
 0x1c2   :  { %v344_v49 = vpack.c.bf16 %v343_v48, %v343_v48 }
 0x1c4   :  { %421 = vmatmul.bf16.vlgmr.msra.gmra.mxu3 %v344_v49 }
 0x1c5   :  { %v341_v50 = vpop.f32.mrf.mxu2 }
 0x247   :  { %v422_v52 = vpop.f32.mrf.mxu3 }
 0x248   :  { %v423_v53 = vadd.f32 %v603_v51, %v422_v52 }
 0x24a   :  { %426 = vst [vmem:[%s801_s9] sm:$0xff] %v423_v53 }
 0x24f   :  { %v424_v54 = vpop.f32.mrf.mxu3 }
 0x250   :  { %431 = vsyncpa [#allocation3], 1 }
 0x251   :  { %432 = vsyncpa [#allocation5], 1 }
 0x252   :  { %433 = vsyncpa [#allocation8], 1 }

// kernel: _forward_pallas.1
= control target key start
LH: loop header
LB: loop body
LE: loop exit
PB: predicated region body
PF: predicated region fallthrough
CT: control target
= control target key end

     0   :  { %14 = vsyncpa [#allocation3], 0  ;;  %s792_s0 = inlined_call_operand.vmem [shape: bf16[8,128], index: 0, kind: input, shape index: {}]   ;;  %s793_s1 = inlined_call_operand.hbm [shape: bf16[128,128], index: 1, kind: input, shape index: {}]   ;;  %s794_s2 = inlined_call_operand.vmem [shape: f32[1,128], index: 2, kind: input, shape index: {}]   ;;  %s795_s3 = inlined_call_operand.hbm [shape: bf16[128,128], index: 3, kind: input, shape index: {}]   ;;  %s796_s4 = inlined_call_operand.vmem [shape: f32[1,128], index: 4, kind: input, shape index: {}]   ;;  %s797_s5 = inlined_call_operand.hbm [shape: bf16[128,128], index: 5, kind: input, shape index: {}]   ;;  %s798_s6 = inlined_call_operand.vmem [shape: f32[1,128], index: 6, kind: input, shape index: {}]   ;;  %s799_s7 = inlined_call_operand.hbm [shape: bf16[128,128], index: 7, kind: input, shape index: {}]   ;;  %s800_s8 = inlined_call_operand.vmem [shape: f32[1,128], index: 8, kind: input, shape index: {}]   ;;  %s801_s9 = inlined_call_operand.vmem [shape: f32[8,128], index: 9, kind: output, shape index: {}]  }
   0x1   :  { %15 = vsyncpa [#allocation5], 0 }
   0x2   :  { %16 = vsyncpa [#allocation8], 0  ;;  %s38_s11 = sshll.u32 %s795_s3, 4  ;;  %s706_s12 = smov [#allocation4]   ;;  %s39_s11 = int_to_ptr.hbm [resolvable:$true] %s38_s11 }
   0x3   :  { %s40_s13 = sshll.u32 %s706_s12, 4  ;;  %s23_s16 = sshll.u32 %s793_s1, 4  ;;  %s41_s13 = int_to_ptr.vmem [resolvable:$true] %s40_s13  ;;  %s24_s16 = int_to_ptr.hbm [resolvable:$true] %s23_s16 }
   0x4   :  { %s707_s17 = smov 64   ;;  %s708_s18 = smov 4  }
   0x5   :  { %46 = dma.hbm_to_vmem [thread:$0]  %s39_s11, 1024, %s41_s13, [#allocation5], %s707_s17, %s707_s17, %s708_s18  }
   0x6   :  { %s709_s19 = smov [#allocation2]   ;;  %s53_s23 = sshll.u32 %s797_s5, 4  ;;  %s54_s23 = int_to_ptr.hbm [resolvable:$true] %s53_s23 }
   0x7   :  { %s25_s20 = sshll.u32 %s709_s19, 4  ;;  %s68_s25 = sshll.u32 %s799_s7, 4  ;;  %s26_s20 = int_to_ptr.vmem [resolvable:$true] %s25_s20  ;;  %s69_s25 = int_to_ptr.hbm [resolvable:$true] %s68_s25 }
   0x8   :  { %31 = dma.hbm_to_vmem [thread:$0]  %s24_s16, 1024, %s26_s20, [#allocation3], %s707_s17, %s707_s17, %s708_s18  }
   0x9   :  { %s710_s26 = smov [#allocation6]   ;;  %s711_s1 = smov [#allocation7]  }
   0xa   :  { %s55_s27 = sshll.u32 %s710_s26, 4  ;;  %s70_s28 = sshll.u32 %s711_s1, 4  ;;  %s56_s27 = int_to_ptr.vmem [resolvable:$true] %s55_s27  ;;  %s71_s28 = int_to_ptr.vmem [resolvable:$true] %s70_s28 }
   0xb   :  { %61 = dma.hbm_to_vmem [thread:$0]  %s54_s23, 1024, %s56_s27, [#allocation5], %s707_s17, %s707_s17, %s708_s18  }
   0xc   :  { %76 = dma.hbm_to_vmem [thread:$0]  %s69_s25, 1024, %s71_s28, [#allocation8], %s707_s17, %s707_s17, %s708_s18  }
   0xd   :  { %700 = dma.done.wait [#allocation3], 1024  }
   0xe   :  { %701 = vsyncadd [#allocation3], 4294966272 }
   0xf   :  { %702 = dma.done.wait [#allocation5], 2048  }
  0x10   :  { %703 = vsyncadd [#allocation5], 4294965248 }
  0x11   :  { %704 = dma.done.wait [#allocation8], 1024  }
  0x12   :  { %705 = vsyncadd [#allocation8], 4294966272  ;;  %v569_v0 = vld [vmem:[#allocation2 + $0x38] sm:$0xff]  ;;  %v568_v1 = vld [vmem:[#allocation2 + $0x30] sm:$0xff] }
  0x13   :  { %164 = vmatpush.bf16.msra.mxu0 %v569_v0  ;;  %v577_v2 = vld [vmem:[#allocation4 + $0x38] sm:$0xff]  ;;  %v576_v3 = vld [vmem:[#allocation4 + $0x30] sm:$0xff]  ;;  %v567_v4 = vld [vmem:[#allocation2 + $0x28] sm:$0xff] }
  0x14   :  { %247 = vmatpush.bf16.msra.mxu1 %v577_v2  ;;  %v575_v5 = vld [vmem:[#allocation4 + $0x28] sm:$0xff]  ;;  %v566_v6 = vld [vmem:[#allocation2 + $0x20] sm:$0xff]  ;;  %v565_v8 = vld [vmem:[#allocation2 + $0x18] sm:$0xff] }
  0x15   :  { %v574_v7 = vld [vmem:[#allocation4 + $0x20] sm:$0xff]  ;;  %v573_v9 = vld [vmem:[#allocation4 + $0x18] sm:$0xff]  ;;  %v564_v10 = vld [vmem:[#allocation2 + $0x10] sm:$0xff] }
  0x16   :  { %v572_v11 = vld [vmem:[#allocation4 + $0x10] sm:$0xff]  ;;  %v563_v12 = vld [vmem:[#allocation2 + $0x8] sm:$0xff]  ;;  %v562_v13 = vld [vmem:[#allocation2] sm:$0xff] }
  0x17   :  { %165 = vmatpush.bf16.msra.mxu0 %v568_v1  ;;  %v95_v14 = vld [vmem:[%s792_s0] sm:$0xf]  ;;  %v571_v15 = vld [vmem:[#allocation4 + $0x8] sm:$0xff]  ;;  %v585_v17 = vld [vmem:[#allocation6 + $0x38] sm:$0xff] }
  0x18   :  { %248 = vmatpush.bf16.msra.mxu1 %v576_v3  ;;  %v570_v16 = vld [vmem:[#allocation4] sm:$0xff]  ;;  %330 = vmatpush.bf16.msra.mxu2 %v585_v17  ;;  %v584_v18 = vld [vmem:[#allocation6 + $0x30] sm:$0xff]  ;;  %v583_v19 = vld [vmem:[#allocation6 + $0x28] sm:$0xff] }
  0x19   :  { %v582_v20 = vld [vmem:[#allocation6 + $0x20] sm:$0xff]  ;;  %v581_v21 = vld [vmem:[#allocation6 + $0x18] sm:$0xff]  ;;  %v580_v22 = vld [vmem:[#allocation6 + $0x10] sm:$0xff] }
  0x1a   :  { %v600_v23 = vld [vmem:[%s794_s2] ss:$0 sm:$0xff]  ;;  %v579_v29 = vld [vmem:[#allocation6 + $0x8] sm:$0xff]  ;;  %v593_v31 = vld [vmem:[#allocation7 + $0x38] sm:$0xff] }
  0x1b   :  { %166 = vmatpush.bf16.msra.mxu0 %v567_v4  ;;  %v578_v30 = vld [vmem:[#allocation6] sm:$0xff]  ;;  %413 = vmatpush.bf16.msra.mxu3 %v593_v31  ;;  %v592_v32 = vld [vmem:[#allocation7 + $0x30] sm:$0xff]  ;;  %v591_v33 = vld [vmem:[#allocation7 + $0x28] sm:$0xff] }
  0x1c   :  { %249 = vmatpush.bf16.msra.mxu1 %v575_v5  ;;  %331 = vmatpush.bf16.msra.mxu2 %v584_v18  ;;  %v590_v34 = vld [vmem:[#allocation7 + $0x20] sm:$0xff]  ;;  %v589_v35 = vld [vmem:[#allocation7 + $0x18] sm:$0xff]  ;;  %v588_v36 = vld [vmem:[#allocation7 + $0x10] sm:$0xff] }
  0x1d   :  { %v601_v37 = vld [vmem:[%s796_s4] ss:$0 sm:$0xff]  ;;  %v587_v43 = vld [vmem:[#allocation7 + $0x8] sm:$0xff] }
  0x1e   :  { %v586_v44 = vld [vmem:[#allocation7] sm:$0xff] }
  0x1f   :  { %167 = vmatpush.bf16.msra.mxu0 %v566_v6  ;;  %414 = vmatpush.bf16.msra.mxu3 %v592_v32  ;;  %v602_v45 = vld [vmem:[%s798_s6] ss:$0 sm:$0xff] }
  0x20   :  { %250 = vmatpush.bf16.msra.mxu1 %v574_v7  ;;  %332 = vmatpush.bf16.msra.mxu2 %v583_v19  ;;  %v603_v51 = vld [vmem:[%s800_s8] ss:$0 sm:$0xff] }
  0x23   :  { %168 = vmatpush.bf16.msra.mxu0 %v565_v8  ;;  %415 = vmatpush.bf16.msra.mxu3 %v591_v33 }
  0x24   :  { %251 = vmatpush.bf16.msra.mxu1 %v573_v9  ;;  %333 = vmatpush.bf16.msra.mxu2 %v582_v20 }
  0x27   :  { %169 = vmatpush.bf16.msra.mxu0 %v564_v10  ;;  %416 = vmatpush.bf16.msra.mxu3 %v590_v34 }
  0x28   :  { %252 = vmatpush.bf16.msra.mxu1 %v572_v11  ;;  %334 = vmatpush.bf16.msra.mxu2 %v581_v21 }
  0x2b   :  { %170 = vmatpush.bf16.msra.mxu0 %v563_v12  ;;  %417 = vmatpush.bf16.msra.mxu3 %v589_v35 }
  0x2c   :  { %253 = vmatpush.bf16.msra.mxu1 %v571_v15  ;;  %335 = vmatpush.bf16.msra.mxu2 %v580_v22 }
  0x2f   :  { %171 = vmatpush.bf16.msra.mxu0 %v562_v13  ;;  %418 = vmatpush.bf16.msra.mxu3 %v588_v36 }
  0x30   :  { %254 = vmatpush.bf16.msra.mxu1 %v570_v16  ;;  %336 = vmatpush.bf16.msra.mxu2 %v579_v29 }
  0x32   :  { %172 = vmatmul.bf16.vlgmr.msra.gmra.mxu0 %v95_v14 }
  0x33   :  { %419 = vmatpush.bf16.msra.mxu3 %v587_v43 }
  0x34   :  { %337 = vmatpush.bf16.msra.mxu2 %v578_v30 }
  0x37   :  { %420 = vmatpush.bf16.msra.mxu3 %v586_v44 }
  0xaf   :  { %v173_v24 = vpop.f32.mrf.mxu0 }
  0xb0   :  { %v174_v25 = vadd.f32 %v600_v23, %v173_v24 }
  0xb2   :  { %v177_v26 = vmax.f32 %v174_v25, 0.0 }
  0xb4   :  { %v178_v27 = vpack.c.bf16 %v177_v26, %v177_v26 }
  0xb6   :  { %255 = vmatmul.bf16.vlgmr.msra.gmra.mxu1 %v178_v27 }
  0xb7   :  { %v175_v28 = vpop.f32.mrf.mxu0 }
 0x133   :  { %v256_v38 = vpop.f32.mrf.mxu1 }
 0x134   :  { %v257_v39 = vadd.f32 %v601_v37, %v256_v38 }
 0x136   :  { %v260_v40 = vmax.f32 %v257_v39, 0.0 }
 0x138   :  { %v261_v41 = vpack.c.bf16 %v260_v40, %v260_v40 }
 0x13a   :  { %338 = vmatmul.bf16.vlgmr.msra.gmra.mxu2 %v261_v41 }
 0x13b   :  { %v258_v42 = vpop.f32.mrf.mxu1 }
 0x1bd   :  { %v339_v46 = vpop.f32.mrf.mxu2 }
 0x1be   :  { %v340_v47 = vadd.f32 %v602_v45, %v339_v46 }
 0x1c0   :  { %v343_v48 = vmax.f32 %v340_v47, 0.0 }
 0x1c2   :  { %v344_v49 = vpack.c.bf16 %v343_v48, %v343_v48 }
 0x1c4   :  { %421 = vmatmul.bf16.vlgmr.msra.gmra.mxu3 %v344_v49 }
 0x1c5   :  { %v341_v50 = vpop.f32.mrf.mxu2 }
 0x247   :  { %v422_v52 = vpop.f32.mrf.mxu3 }
 0x248   :  { %v423_v53 = vadd.f32 %v603_v51, %v422_v52 }
 0x24a   :  { %426 = vst [vmem:[%s801_s9] sm:$0xff] %v423_v53 }
 0x24f   :  { %v424_v54 = vpop.f32.mrf.mxu3 }
 0x250   :  { %431 = vsyncpa [#allocation3], 1 }
 0x251   :  { %432 = vsyncpa [#allocation5], 1 }
 0x252   :  { %433 = vsyncpa [#allocation8], 1 }

</bundles_post_ra>
